<compile_context>
chip_gen: v7x
topology: tpu7x:2x2x1
jax: 0.10.0
libtpu: 0.0.40
codegen_flags: <defaults>
</compile_context>

<pallas_src>
import functools
import math

import jax
import jax.numpy as jnp
import numpy as np
from jax.experimental import pallas as pl
from jax.experimental.pallas import tpu as pltpu

_HIGHEST = jax.lax.Precision.HIGHEST
_LANE_ALIGN = 256            # MXU N width on v6e/v7x; multiple of v5e's 128.


def _osa_kernel(obs_ref, st_ref, wqt_ref, wkvt_ref, mixt_ref, hsum_ref,
                out_ref, *, he):
    """One batch tile, batch on the lane axis.
    obs [Do, TB], st [Ds, TB], wqt [HE, Do], wkvt [2HE, Ds],
    mixt [HE, HE], hsum [E, HE], out [E, TB].
    """
    # Projections (MXU).  Inputs keep the caller's dtype (bf16 is single-pass);
    # HIGHEST only costs extra passes for f32 operands, where accuracy needs it.
    q = jnp.dot(wqt_ref[...], obs_ref[...],
                preferred_element_type=jnp.float32, precision=_HIGHEST)    # [HE, TB]
    kv = jnp.dot(wkvt_ref[...], st_ref[...],
                 preferred_element_type=jnp.float32, precision=_HIGHEST)   # [2HE, TB]
    k = kv[:he]          # 8-aligned sublane slices: no data movement
    v = kv[he:]

    # mixt[h*E+e, h*E+e'] = softmax(Wm)[h,e] / sqrt(E): one matmul performs the
    # per-head q.k reduction and scatters the scaled dot onto that head's rows.
    weighted = jnp.dot(mixt_ref[...], q * k,
                       preferred_element_type=jnp.float32)                 # [HE, TB]
    # hsum[e, h*E+e] = 1: sums over heads.  Indicator matmuls use DEFAULT MXU
    # precision (perf review); residual error is well below 1e-2 absolute.
    out = jnp.dot(hsum_ref[...], weighted * v,
                  preferred_element_type=jnp.float32)                      # [E, TB]
    out_ref[...] = out.astype(out_ref.dtype)


def _prepare_params(wq, wk, wv, merger_w, heads, emb, in_dtype):
    """Resident kernel operands (pure function of weights, built once)."""
    f32 = jnp.float32
    he = heads * emb

    # Projection weights, transposed for the [feature, batch] layout; cast to
    # the streamed-input dtype so bf16 inputs hit the MXU natively.
    wqt = wq.T.astype(in_dtype)                                     # [HE, Do]
    wkvt = jnp.concatenate([wk.T, wv.T], axis=0).astype(in_dtype)   # [2HE, Ds]

    # Merger head weights: softmax over heads (H>1) or identity (H==1 -> the
    # PyTorch Merger just squeezes), with the 1/sqrt(E) scale folded in.
    if heads > 1:
        mw = jax.nn.softmax(merger_w.astype(f32), axis=0)           # [H, E]
    else:
        mw = jnp.ones((1, emb), f32)
    mw_col = (mw * (1.0 / math.sqrt(emb))).reshape(he, 1)           # [HE, 1]

    head_of = np.arange(he) // emb
    same_head = (head_of[:, None] == head_of[None, :]).astype(np.float32)
    mixt = jnp.asarray(same_head) * mw_col                          # [HE, HE]

    # hsum[e, h*E + e] = 1 : sums the per-head rows -> [E, *].
    hsum = jnp.asarray(np.tile(np.eye(emb, dtype=np.float32), (1, heads)))  # [E, HE]
    return wqt, wkvt, mixt, hsum


def _pick_batch_tile(batch, do, ds, he, emb, vmem_budget_bytes=12 << 20):
    """Batch-tile columns (lane dim) fitting a conservative VMEM budget.

    With batch on the lane axis there is no lane padding to correct for, and
    the sublane dims (Do/Ds/HE/2HE/E) are already multiples of 8.  The budget
    stays well inside v7x's 64 MiB physical / 32 MiB scoped VMEM.
    """
    if batch <= _LANE_ALIGN:
        return batch                    # single full-extent tile (always legal)
    # f32 bytes per batch column: double-buffered obs/st/out blocks plus the
    # q/kv/prod/weighted/vw intermediates (~6*HE rows).
    per_col = 4 * (2 * (do + ds + emb) + 6 * he)
    tb = vmem_budget_bytes // max(per_col, 1)
    # Guarantee >=2 grid steps for large batches so both v7x TensorCores work.
    half_up = pl.cdiv(pl.cdiv(batch, 2), _LANE_ALIGN) * _LANE_ALIGN
    tb = min(tb, half_up, 4096)
    return int(max(_LANE_ALIGN, (tb // _LANE_ALIGN) * _LANE_ALIGN))


def observe_state_attention(observe, state, wq, wk, wv, merger_w, *,
                            heads, emb, batch_tile=None):
    """observe [B, Do], state [B, Ds], wq [Do, H*E], wk/wv [Ds, H*E],
    merger_w [H, E]  ->  [B, E] (float32)."""
    b, do = observe.shape
    ds = state.shape[1]
    he = heads * emb

    wqt, wkvt, mixt, hsum = _prepare_params(wq, wk, wv, merger_w, heads, emb,
                                            observe.dtype)

    tb = batch_tile if batch_tile is not None else _pick_batch_tile(
        b, do, ds, he, emb)
    grid = (pl.cdiv(b, tb),)

    # Batch-on-lanes layout: the transposes are wrapper-side layout plumbing;
    # callers that already hold feature-major activations can skip them.
    obs_t = observe.T            # [Do, B]
    st_t = state.T               # [Ds, B]

    in_bytes = jnp.dtype(observe.dtype).itemsize
    flops = 2 * b * (he * do + 2 * he * ds + he * he + emb * he)
    bytes_accessed = (b * (do + ds) * in_bytes + b * emb * 4
                      + 4 * (he * do + 2 * he * ds + he * he + emb * he))

    out_t = pl.pallas_call(
        functools.partial(_osa_kernel, he=he),
        out_shape=jax.ShapeDtypeStruct((emb, b), jnp.float32),
        grid=grid,
        in_specs=[
            pl.BlockSpec((do, tb), lambda i: (0, i)),        # observe^T tile
            pl.BlockSpec((ds, tb), lambda i: (0, i)),        # state^T tile
            pl.BlockSpec((he, do), lambda i: (0, 0)),        # Wq^T    (resident)
            pl.BlockSpec((2 * he, ds), lambda i: (0, 0)),    # Wkv^T   (resident)
            pl.BlockSpec((he, he), lambda i: (0, 0)),        # mix     (resident)
            pl.BlockSpec((emb, he), lambda i: (0, 0)),       # head-sum (resident)
        ],
        out_specs=pl.BlockSpec((emb, tb), lambda i: (0, i)),
        compiler_params=pltpu.CompilerParams(
            dimension_semantics=("parallel",),
            vmem_limit_bytes=32 * 1024 * 1024),
        cost_estimate=pl.CostEstimate(
            flops=int(flops), transcendentals=0,
            bytes_accessed=int(bytes_accessed)),
    )(obs_t, st_t, wqt, wkvt, mixt, hsum)

    return out_t.T               # [B, E]


def _reference(observe, state, wq, wk, wv, merger_w, *, heads, emb):
    b = observe.shape[0]
    q = jnp.dot(observe, wq, precision=_HIGHEST).reshape(b, heads, emb)
    k = jnp.dot(state, wk, precision=_HIGHEST).reshape(b, heads, emb)
    v = jnp.dot(state, wv, precision=_HIGHEST).reshape(b, heads, emb)
    dot = jnp.sum(q * k, axis=-1, keepdims=True) / math.sqrt(emb)    # [B, H, 1]
    out = dot * v                                                    # [B, H, E]
    if heads > 1:
        mw = jax.nn.softmax(merger_w, axis=0)                        # [H, E]
        return jnp.sum(mw[None] * out, axis=1)                       # [B, E]
    return out[:, 0, :]


if __name__ == "__main__":
    B = 2
    OBSERVE_SIZE = 16
    STATE_SIZE = 32
    HEADS = 4
    EMB = 8

    key = jax.random.PRNGKey(0)
    k_obs, k_st, k_q, k_k, k_v = jax.random.split(key, 5)

    observe = jax.random.normal(k_obs, (B, OBSERVE_SIZE), jnp.float32)
    state = jax.random.normal(k_st, (B, STATE_SIZE), jnp.float32)

    # nn.Linear(in, out, bias=False) weights, stored pre-transposed as [in, out].
    def linear_w(k, fan_in, fan_out):
        bound = 1.0 / math.sqrt(fan_in)
        return jax.random.uniform(k, (fan_in, fan_out), jnp.float32, -bound, bound)

    wq = linear_w(k_q, OBSERVE_SIZE, HEADS * EMB)
    wk = linear_w(k_k, STATE_SIZE, HEADS * EMB)
    wv = linear_w(k_v, STATE_SIZE, HEADS * EMB)

    # Merger weight: Parameter(torch.Tensor(1, head, fea_dim).fill_(1.0)) -> ones.
    merger_w = jnp.ones((HEADS, EMB), jnp.float32)

    # Small-shape check (single tile, full-extent blocks).
    out = observe_state_attention(observe, state, wq, wk, wv, merger_w,
                                  heads=HEADS, emb=EMB)
    out = jax.block_until_ready(out)
    ref = _reference(observe, state, wq, wk, wv, merger_w, heads=HEADS, emb=EMB)
    assert out.shape == (B, EMB)
    # Indicator matmuls run at DEFAULT MXU precision -> small (<~1e-3) absolute
    # deviation vs the all-f32 reference (tolerance relaxed per perf review).
    assert jnp.allclose(out, ref, atol=2e-3, rtol=2e-3), "mismatch (B=2)"

    # Exercise the batch grid (4 parallel steps, 128-lane-wide tiles).
    B2 = 512
    kb_obs, kb_st = jax.random.split(jax.random.PRNGKey(1), 2)
    observe_b = jax.random.normal(kb_obs, (B2, OBSERVE_SIZE), jnp.float32)
    state_b = jax.random.normal(kb_st, (B2, STATE_SIZE), jnp.float32)
    out_b = observe_state_attention(observe_b, state_b, wq, wk, wv, merger_w,
                                    heads=HEADS, emb=EMB, batch_tile=128)
    out_b = jax.block_until_ready(out_b)
    ref_b = _reference(observe_b, state_b, wq, wk, wv, merger_w,
                       heads=HEADS, emb=EMB)
    assert out_b.shape == (B2, EMB)
    assert jnp.allclose(out_b, ref_b, atol=2e-3, rtol=2e-3), "mismatch (B=512)"

    print("KERNEL_OK")
</pallas_src>

<mosaic_0001>
module attributes {stable_mosaic.version = 11 : i64} {
  func.func @_osa_kernel(%arg0: i32, %arg1: memref<16x2xf32, #tpu.memory_space<vmem>>, %arg2: memref<32x2xf32, #tpu.memory_space<vmem>>, %arg3: memref<32x16xf32, #tpu.memory_space<vmem>>, %arg4: memref<64x32xf32, #tpu.memory_space<vmem>>, %arg5: memref<32x32xf32, #tpu.memory_space<vmem>>, %arg6: memref<8x32xf32, #tpu.memory_space<vmem>>, %arg7: memref<8x2xf32, #tpu.memory_space<vmem>>) attributes {dimension_semantics = [#tpu.dimension_semantics<parallel>], iteration_bounds = array<i64: 1>, scalar_prefetch = 0 : i64, scratch_operands = 0 : i64, tpu.core_type = #tpu.core_type<tc>, window_params = [{transform_indices = @transform_0, window_bounds = array<i64: 16, 2>}, {transform_indices = @transform_1, window_bounds = array<i64: 32, 2>}, {pipeline_mode = #tpu.pipeline_mode<synchronous>, transform_indices = @transform_2, window_bounds = array<i64: 32, 16>}, {pipeline_mode = #tpu.pipeline_mode<synchronous>, transform_indices = @transform_3, window_bounds = array<i64: 64, 32>}, {pipeline_mode = #tpu.pipeline_mode<synchronous>, transform_indices = @transform_4, window_bounds = array<i64: 32, 32>}, {pipeline_mode = #tpu.pipeline_mode<synchronous>, transform_indices = @transform_5, window_bounds = array<i64: 8, 32>}, {transform_indices = @transform_6, window_bounds = array<i64: 8, 2>}]} {
    %c0 = arith.constant 0 : index
    %c0_0 = arith.constant 0 : index
    %0 = vector.load %arg3[%c0, %c0_0] : memref<32x16xf32, #tpu.memory_space<vmem>>, vector<32x16xf32>
    %c0_1 = arith.constant 0 : index
    %c0_2 = arith.constant 0 : index
    %1 = vector.load %arg1[%c0_1, %c0_2] : memref<16x2xf32, #tpu.memory_space<vmem>>, vector<16x2xf32>
    %cst = arith.constant dense<0.000000e+00> : vector<32x2xf32>
    %2 = tpu.matmul %0, %1, %cst {dimension_numbers = #tpu.dot_dimension_numbers<[1], [0], [0], [1], [0, 0, 1, 1], [], []>, precision = #tpu.contract_precision<fp32>} : vector<32x16xf32>, vector<16x2xf32>, vector<32x2xf32> -> vector<32x2xf32>
    %c0_3 = arith.constant 0 : index
    %c0_4 = arith.constant 0 : index
    %3 = vector.load %arg4[%c0_3, %c0_4] : memref<64x32xf32, #tpu.memory_space<vmem>>, vector<64x32xf32>
    %c0_5 = arith.constant 0 : index
    %c0_6 = arith.constant 0 : index
    %4 = vector.load %arg2[%c0_5, %c0_6] : memref<32x2xf32, #tpu.memory_space<vmem>>, vector<32x2xf32>
    %cst_7 = arith.constant dense<0.000000e+00> : vector<64x2xf32>
    %5 = tpu.matmul %3, %4, %cst_7 {dimension_numbers = #tpu.dot_dimension_numbers<[1], [0], [0], [1], [0, 0, 1, 1], [], []>, precision = #tpu.contract_precision<fp32>} : vector<64x32xf32>, vector<32x2xf32>, vector<64x2xf32> -> vector<64x2xf32>
    %6 = vector.extract_strided_slice %5 {offsets = [0, 0], sizes = [32, 2], strides = [1, 1]} : vector<64x2xf32> to vector<32x2xf32>
    %7 = vector.extract_strided_slice %5 {offsets = [32, 0], sizes = [32, 2], strides = [1, 1]} : vector<64x2xf32> to vector<32x2xf32>
    %c0_8 = arith.constant 0 : index
    %c0_9 = arith.constant 0 : index
    %8 = vector.load %arg5[%c0_8, %c0_9] : memref<32x32xf32, #tpu.memory_space<vmem>>, vector<32x32xf32>
    %9 = arith.mulf %2, %6 : vector<32x2xf32>
    %cst_10 = arith.constant dense<0.000000e+00> : vector<32x2xf32>
    %10 = tpu.matmul %8, %9, %cst_10 {dimension_numbers = #tpu.dot_dimension_numbers<[1], [0], [0], [1], [0, 0, 1, 1], [], []>} : vector<32x32xf32>, vector<32x2xf32>, vector<32x2xf32> -> vector<32x2xf32>
    %c0_11 = arith.constant 0 : index
    %c0_12 = arith.constant 0 : index
    %11 = vector.load %arg6[%c0_11, %c0_12] : memref<8x32xf32, #tpu.memory_space<vmem>>, vector<8x32xf32>
    %12 = arith.mulf %10, %7 : vector<32x2xf32>
    %cst_13 = arith.constant dense<0.000000e+00> : vector<8x2xf32>
    %13 = tpu.matmul %11, %12, %cst_13 {dimension_numbers = #tpu.dot_dimension_numbers<[1], [0], [0], [1], [0, 0, 1, 1], [], []>} : vector<8x32xf32>, vector<32x2xf32>, vector<8x2xf32> -> vector<8x2xf32>
    %c0_14 = arith.constant 0 : index
    %c0_15 = arith.constant 0 : index
    %14 = vector.load %arg7[%c0_14, %c0_15] : memref<8x2xf32, #tpu.memory_space<vmem>>, vector<8x2xf32>
    tpu.vector_store %arg7[%c0_14, %c0_15], %13 {strides = array<i32>} : memref<8x2xf32, #tpu.memory_space<vmem>>, vector<8x2xf32>,
    return
  }
  func.func @transform_0(%arg0: i32) -> (i32, i32) {
    %c0_i32 = arith.constant 0 : i32
    %c0_i32_0 = arith.constant 0 : i32
    return %c0_i32, %arg0 : i32, i32
  }
  func.func @transform_1(%arg0: i32) -> (i32, i32) {
    %c0_i32 = arith.constant 0 : i32
    %c0_i32_0 = arith.constant 0 : i32
    return %c0_i32, %arg0 : i32, i32
  }
  func.func @transform_2(%arg0: i32) -> (i32, i32) {
    %c0_i32 = arith.constant 0 : i32
    %c0_i32_0 = arith.constant 0 : i32
    %c0_i32_1 = arith.constant 0 : i32
    return %c0_i32, %c0_i32_0 : i32, i32
  }
  func.func @transform_3(%arg0: i32) -> (i32, i32) {
    %c0_i32 = arith.constant 0 : i32
    %c0_i32_0 = arith.constant 0 : i32
    %c0_i32_1 = arith.constant 0 : i32
    return %c0_i32, %c0_i32_0 : i32, i32
  }
  func.func @transform_4(%arg0: i32) -> (i32, i32) {
    %c0_i32 = arith.constant 0 : i32
    %c0_i32_0 = arith.constant 0 : i32
    %c0_i32_1 = arith.constant 0 : i32
    return %c0_i32, %c0_i32_0 : i32, i32
  }
  func.func @transform_5(%arg0: i32) -> (i32, i32) {
    %c0_i32 = arith.constant 0 : i32
    %c0_i32_0 = arith.constant 0 : i32
    %c0_i32_1 = arith.constant 0 : i32
    return %c0_i32, %c0_i32_0 : i32, i32
  }
  func.func @transform_6(%arg0: i32) -> (i32, i32) {
    %c0_i32 = arith.constant 0 : i32
    %c0_i32_0 = arith.constant 0 : i32
    return %c0_i32, %arg0 : i32, i32
  }
}

</mosaic_0001>

<bundles_post_ra>
// kernel: tpu_custom_call.1
= control target key start
LH: loop header
LB: loop body
LE: loop exit
PB: predicated region body
PF: predicated region fallthrough
CT: control target
= control target key end

     0   :  { %vm29_vm0 = vcmask 130048   ;;  %vm642_vm1 = vcmask 261120   ;;  %vm2123_vm2 = vmmov 0   ;;  %vm1636_vm3 = vcmask 15360   ;;  %s2471_s0 = inlined_call_operand.vmem [shape: f32[16,2], index: 0, kind: input, shape index: {}]   ;;  %s2472_s2 = inlined_call_operand.vmem [shape: f32[32,16], index: 2, kind: input, shape index: {}]   ;;  %s2473_s1 = inlined_call_operand.vmem [shape: f32[32,2], index: 1, kind: input, shape index: {}]   ;;  %s2474_s3 = inlined_call_operand.vmem [shape: f32[64,32], index: 3, kind: input, shape index: {}]   ;;  %s2475_s4 = inlined_call_operand.vmem [shape: f32[32,32], index: 4, kind: input, shape index: {}]   ;;  %s2476_s5 = inlined_call_operand.vmem [shape: f32[8,32], index: 5, kind: input, shape index: {}]   ;;  %s2477_s6 = inlined_call_operand.vmem [shape: f32[8,2], index: 6, kind: output, shape index: {}]  }
   0x1   :  { %v27_v0 = vld [vmem:[%s2471_s0] sm:$0xff]  ;;  %v28_v1 = vld [vmem:[%s2471_s0 + $0x8] sm:$0xff]  ;;  %v25_v13 = vld [vmem:[%s2472_s2 + $0x10] sm:$0xff] }
   0x2   :  { %v23_v2 = vld [vmem:[%s2472_s2] sm:$0xff]  ;;  %v43_v3 = vand.u32 4294901760, %v27_v0  ;;  %v46_v4 = vand.u32 4294901760, %v28_v1  ;;  %v24_v6 = vld [vmem:[%s2472_s2 + $0x8] sm:$0xff]  ;;  %v26_v14 = vld [vmem:[%s2472_s2 + $0x18] sm:$0xff]  ;;  %v37_v17 = vsel %vm29_vm0, %v25_v13, 0 }
   0x3   :  { %v31_v5 = vsel %vm29_vm0, %v23_v2, 0  ;;  %v2176_v7 = vld [vmem:[%s2473_s1] sm:$0xff]  ;;  %v2181_v8 = vld [vmem:[%s2473_s1 + $0x8] sm:$0xff]  ;;  %v34_v10 = vsel %vm29_vm0, %v24_v6, 0  ;;  %v40_v18 = vsel %vm29_vm0, %v26_v14, 0  ;;  %v2217_v23 = vand.u32 4294901760, %v37_v17 }
   0x4   :  { %v2183_v9 = vand.u32 4294901760, %v31_v5  ;;  %v668_v11 = vand.u32 4294901760, %v2176_v7  ;;  %v671_v12 = vand.u32 4294901760, %v2181_v8  ;;  %v2194_v15 = vpack.c.bf16 %v46_v4, %v43_v3  ;;  %v2258_v42 = vld [vmem:[%s2473_s1 + $0x10] sm:$0xff]  ;;  %v2263_v43 = vld [vmem:[%s2473_s1 + $0x18] sm:$0xff]  ;;  %v630_v48 = vld [vmem:[%s2474_s3] sm:$0xff] }
   0x5   :  { %v2196_v16 = vand.u32 4294901760, %v34_v10  ;;  %v2219_v24 = vand.u32 4294901760, %v40_v18  ;;  %v2221_v25 = vsub.f32 %v27_v0, %v43_v3  ;;  %v2227_v29 = vsub.f32 %v28_v1, %v46_v4  ;;  %v632_v6 = vld [vmem:[%s2474_s3 + $0x10] sm:$0xff] }
   0x6   :  { %v2201_v19 = vsub.f32 %v31_v5, %v2183_v9  ;;  %v2206_v20 = vsub.f32 %v2176_v7, %v668_v11  ;;  %v2211_v21 = vsub.f32 %v2181_v8, %v671_v12  ;;  %1974 = vmatprep.subr.bf16.mxu0 %v2194_v15  ;;  %v2231_v31 = vsub.f32 %v37_v17, %v2217_v23  ;;  %v631_v5 = vld [vmem:[%s2474_s3 + $0x8] sm:$0xff] }
   0x7   :  { %v2215_v22 = vsub.f32 %v34_v10, %v2196_v16  ;;  %1976 = vmatpush3.bf16.msra.mxu0 %v2194_v15  ;;  %v2234_v32 = vsub.f32 %v40_v18, %v2219_v24  ;;  %v152_v33 = vand.u32 4294901760, %v2221_v25  ;;  %v159_v37 = vand.u32 4294901760, %v2227_v29 }
   0x8   :  { %v111_v26 = vand.u32 4294901760, %v2201_v19  ;;  %v819_v27 = vand.u32 4294901760, %v2206_v20  ;;  %v826_v28 = vand.u32 4294901760, %v2211_v21  ;;  %v131_v39 = vand.u32 4294901760, %v2231_v31 }
   0x9   :  { %v121_v30 = vand.u32 4294901760, %v2215_v22  ;;  %v141_v40 = vand.u32 4294901760, %v2234_v32  ;;  %v153_v41 = vsub.f32 %v2221_v25, %v152_v33  ;;  %v160_v47 = vsub.f32 %v2227_v29, %v159_v37 }
   0xa   :  { %v112_v34 = vsub.f32 %v2201_v19, %v111_v26  ;;  %v820_v35 = vsub.f32 %v2206_v20, %v819_v27  ;;  %v827_v36 = vsub.f32 %v2211_v21, %v826_v28  ;;  %v132_v50 = vsub.f32 %v2231_v31, %v131_v39 }
   0xb   :  { %v122_v38 = vsub.f32 %v2215_v22, %v121_v30  ;;  %v142_v51 = vsub.f32 %v2234_v32, %v141_v40  ;;  %v154_v52 = vand.u32 4294901760, %v153_v41  ;;  %v161_v54 = vand.u32 4294901760, %v160_v47  ;;  %v636_v47 = vld [vmem:[%s2474_s3 + $0x30] sm:$0xff] }
   0xc   :  { %v113_v44 = vand.u32 4294901760, %v112_v34  ;;  %v821_v45 = vand.u32 4294901760, %v820_v35  ;;  %v828_v46 = vand.u32 4294901760, %v827_v36  ;;  %v674_v55 = vand.u32 4294901760, %v2258_v42  ;;  %v633_v34 = vld [vmem:[%s2474_s3 + $0x18] sm:$0xff]  ;;  %v634_v36 = vld [vmem:[%s2474_s3 + $0x20] sm:$0xff] }
   0xd   :  { %v123_v49 = vand.u32 4294901760, %v122_v38  ;;  %v677_v56 = vand.u32 4294901760, %v2263_v43  ;;  %v133_v57 = vand.u32 4294901760, %v132_v50  ;;  %v143_v58 = vand.u32 4294901760, %v142_v51 }
   0xe   :  { %1772 = vmatprep.mubr.f32.mxu0 %v113_v44  ;;  %v2005_v53 = vpack.c.bf16 %v828_v46, %v821_v45  ;;  %v2280_v59 = vsel %vm642_vm1, %v630_v48, 0  ;;  %v1977_v60 = vpack.c.bf16 %v161_v54, %v154_v52  ;;  %v2285_v61 = vsub.f32 %v2258_v42, %v674_v55  ;;  %v635_v46 = vld [vmem:[%s2474_s3 + $0x28] sm:$0xff] }
   0xf   :  { %1773 = vmatmul.mubr.f32.vlgmr.msra.gmra.mrb[0].mxu0 %v123_v49  ;;  %v2290_v62 = vsub.f32 %v2263_v43, %v677_v56  ;;  %v2293_v63 = vand.u32 4294901760, %v2280_v59  ;;  %v1981_v0 = vpack.c.bf16 %v2227_v29, %v2221_v25  ;;  %v647_v14 = vsel %vm642_vm1, %v631_v5, 0  ;;  %v637_v25 = vld [vmem:[%s2474_s3 + $0x38] sm:$0xff]  ;;  %v1453_v5 = vld [vmem:[%s2475_s4] sm:$0xff] }
  0x10   :  { %2006 = vmatprep.subr.bf16.mxu1 %v2005_v53  ;;  %1775 = vmatprep.mubr.f32.mxu0 %v133_v57  ;;  %v833_v1 = vand.u32 4294901760, %v2285_v61  ;;  %v650_v18 = vsel %vm642_vm1, %v632_v6, 0  ;;  %v2013_v35 = vpack.c.bf16 %v2211_v21, %v2206_v20  ;;  %v2326_v38 = vand.u32 4294901760, %v647_v14 }
  0x11   :  { %2008 = vmatpush3.bf16.msra.mxu1 %v2005_v53  ;;  %1978 = vmatprep.subr.bf16.mxu0 %v1977_v60  ;;  %v840_v2 = vand.u32 4294901760, %v2290_v62  ;;  %v2328_v41 = vand.u32 4294901760, %v650_v18  ;;  %v653_v44 = vsel %vm642_vm1, %v633_v34, 0  ;;  %v656_v45 = vsel %vm642_vm1, %v634_v36, 0 }
  0x12   :  { %1856 = vmatprep.mubr.f32.mxu1 %v2293_v63  ;;  %v834_v3 = vsub.f32 %v2285_v61, %v833_v1  ;;  %1980 = vmatpush3.bf16.msra.mxu0 %v1977_v60  ;;  %v2017_v48 = vpack.c.bf16 %v2290_v62, %v2285_v61  ;;  %v2343_v49 = vand.u32 4294901760, %v653_v44  ;;  %v1989_v50 = vpack.c.bf16 %v159_v37, %v152_v33 }
  0x13   :  { %1776 = vmatmul.mubr.f32.gmra.mrb[2].mxu0 %v143_v58  ;;  %v841_v4 = vsub.f32 %v2290_v62, %v840_v2  ;;  %1982 = vmatprep.subr.bf16.mxu0 %v1981_v0  ;;  %v2350_v51 = vand.u32 4294901760, %v656_v45  ;;  %v659_v52 = vsel %vm642_vm1, %v635_v46, 0  ;;  %v662_v53 = vsel %vm642_vm1, %v636_v47, 0 }
  0x14   :  { %1782 = vmatprep.mubr.f32.mxu0 %v2183_v9  ;;  %v835_v10 = vand.u32 4294901760, %v834_v3  ;;  %v2363_v29 = vpack.c.bf16 %v671_v12, %v668_v11  ;;  %v2367_v33 = vand.u32 4294901760, %v659_v52  ;;  %v2370_v37 = vand.u32 4294901760, %v662_v53 }
  0x15   :  { %v842_v13 = vand.u32 4294901760, %v841_v4  ;;  %v665_v7 = vsel %vm642_vm1, %v637_v25, 0  ;;  %v737_v11 = vsub.f32 %v2280_v59, %v2293_v63  ;;  %v747_v12 = vsub.f32 %v647_v14, %v2326_v38 }
  0x16   :  { %v2378_v8 = vand.u32 4294901760, %v665_v7 }
  0x17   :  { %1783 = vmatmul.mubr.f32.vlgmr.msra.gmra.mrb[0].mxu0 %v2196_v16  ;;  %v2009_v17 = vpack.c.bf16 %v842_v13, %v835_v10  ;;  %v748_v21 = vand.u32 4294901760, %v747_v12 }
  0x18   :  { %1785 = vmatprep.mubr.f32.mxu0 %v2217_v23  ;;  %1984 = vmatpush3.bf16.msra.mxu0 %v1981_v0  ;;  %v807_v20 = vsub.f32 %v665_v7, %v2378_v8 }
  0x19   :  { %1986 = vmatprep.subr.bf16.mxu0 %v2194_v15  ;;  %2010 = vmatprep.subr.bf16.mxu1 %v2009_v17  ;;  %v749_v42 = vsub.f32 %v747_v12, %v748_v21 }
  0x1a   :  { %2012 = vmatpush3.bf16.msra.mxu1 %v2009_v17  ;;  %v808_v0 = vand.u32 4294901760, %v807_v20 }
  0x1b   :  { %1786 = vmatmul.mubr.f32.gmra.mrb[2].mxu0 %v2219_v24  ;;  %2014 = vmatprep.subr.bf16.mxu1 %v2013_v35 }
  0x1c   :  { %1792 = vmatprep.mubr.f32.mxu0 %v2201_v19  ;;  %v757_v19 = vsub.f32 %v650_v18, %v2328_v41 }
  0x1d   :  { %1857 = vmatmul.mubr.f32.vlgmr.msra.gmra.mrb[0].mxu1 %v2326_v38 }
  0x1e   :  { %1859 = vmatprep.mubr.f32.mxu1 %v2328_v41  ;;  %2016 = vmatpush3.bf16.msra.mxu1 %v2013_v35 }
  0x1f   :  { %1793 = vmatmul.mubr.f32.vlgmr.msra.gmra.mrb[0].mxu0 %v2215_v22  ;;  %2018 = vmatprep.subr.bf16.mxu1 %v2017_v48  ;;  %v2398_v22 = vpack.c.bf16 %v677_v56, %v674_v55 }
  0x20   :  { %1795 = vmatprep.mubr.f32.mxu0 %v2231_v31  ;;  %1988 = vmatpush3.bf16.msra.mxu0 %v2194_v15  ;;  %v2029_v31 = vpack.c.bf16 %v826_v28, %v819_v27  ;;  %v758_v27 = vand.u32 4294901760, %v757_v19 }
  0x21   :  { %1860 = vmatmul.mubr.f32.gmra.mrb[2].mxu1 %v2343_v49  ;;  %1990 = vmatprep.subr.bf16.mxu0 %v1989_v50 }
  0x22   :  { %1862 = vmatprep.mubr.f32.mxu1 %v2350_v51  ;;  %2020 = vmatpush3.bf16.msra.mxu1 %v2017_v48  ;;  %v759_v43 = vsub.f32 %v757_v19, %v758_v27 }
  0x23   :  { %1796 = vmatmul.mubr.f32.gmra.mrb[2].mxu0 %v2234_v32  ;;  %2022 = vmatprep.subr.bf16.mxu1 %v2363_v29  ;;  %v787_v32 = vsub.f32 %v659_v52, %v2367_v33 }
  0x24   :  { %1802 = vmatprep.mubr.f32.mxu0 %v111_v26  ;;  %v767_v26 = vsub.f32 %v653_v44, %v2343_v49  ;;  %v760_v56 = vand.u32 4294901760, %v759_v43 }
  0x25   :  { %1863 = vmatmul.mubr.f32.gmra.mrb[4].mxu1 %v2367_v33  ;;  %v788_v58 = vand.u32 4294901760, %v787_v32 }
  0x26   :  { %1865 = vmatprep.mubr.f32.mxu1 %v2370_v37 }
  0x27   :  { %1803 = vmatmul.mubr.f32.vlgmr.msra.gmra.mrb[0].mxu0 %v121_v30  ;;  %v777_v30 = vsub.f32 %v656_v45, %v2350_v51  ;;  %v789_v60 = vsub.f32 %v787_v32, %v788_v58 }
  0x28   :  { %1805 = vmatprep.mubr.f32.mxu0 %v131_v39  ;;  %1992 = vmatpush3.bf16.msra.mxu0 %v1989_v50  ;;  %v738_v39 = vand.u32 4294901760, %v737_v11 }
  0x29   :  { %1994 = vmatprep.subr.bf16.mxu0 %v2194_v15  ;;  %1866 = vmatmul.mubr.f32.gmra.mrb[6].mxu1 %v2378_v8  ;;  %v778_v54 = vand.u32 4294901760, %v777_v30 }
  0x2a   :  { %1876 = vmatprep.mubr.f32.mxu1 %v737_v11 }
  0x2b   :  { %1806 = vmatmul.mubr.f32.gmra.mrb[2].mxu0 %v141_v40  ;;  %v797_v40 = vsub.f32 %v662_v53, %v2370_v37  ;;  %v779_v57 = vsub.f32 %v777_v30, %v778_v54 }
  0x2c   :  { %1812 = vmatprep.mubr.f32.mxu0 %v2183_v9 }
  0x2d   :  { %1877 = vmatmul.mubr.f32.vlgmr.msra.gmra.mrb[0].mxu1 %v747_v12  ;;  %v798_v59 = vand.u32 4294901760, %v797_v40  ;;  %v780_v61 = vand.u32 4294901760, %v779_v57 }
  0x2e   :  { %1879 = vmatprep.mubr.f32.mxu1 %v757_v19  ;;  %2024 = vmatpush3.bf16.msra.mxu1 %v2363_v29 }
  0x2f   :  { %1813 = vmatmul.mubr.f32.vlgmr.msra.gmra.mrb[0].mxu0 %v2196_v16  ;;  %2026 = vmatprep.subr.bf16.mxu1 %v2398_v22  ;;  %v799_v62 = vsub.f32 %v797_v40, %v798_v59 }
  0x30   :  { %1815 = vmatprep.mubr.f32.mxu0 %v2217_v23  ;;  %1996 = vmatpush3.bf16.msra.mxu0 %v2194_v15  ;;  %v739_v15 = vsub.f32 %v737_v11, %v738_v39 }
  0x31   :  { %1880 = vmatmul.mubr.f32.gmra.mrb[2].mxu1 %v767_v26  ;;  %1998 = vmatprep.subr.bf16.mxu0 %v2363_v29  ;;  %v800_v3 = vand.u32 4294901760, %v799_v62 }
  0x32   :  { %1882 = vmatprep.mubr.f32.mxu1 %v777_v30  ;;  %2028 = vmatpush3.bf16.msra.mxu1 %v2398_v22  ;;  %v740_v28 = vand.u32 4294901760, %v739_v15  ;;  %v1454_v30 = vld [vmem:[%s2475_s4 + $0x8] sm:$0xff]  ;;  %v2124_v15 = vmov 0.0  }
  0x33   :  { %1816 = vmatmul.mubr.f32.gmra.mrb[2].mxu0 %v2219_v24  ;;  %2030 = vmatprep.subr.bf16.mxu1 %v2029_v31 }
  0x34   :  { %1822 = vmatprep.mubr.f32.mxu0 %v2183_v9  ;;  %v768_v9 = vand.u32 4294901760, %v767_v26 }
  0x35   :  { %1883 = vmatmul.mubr.f32.gmra.mrb[4].mxu1 %v787_v32  ;;  %v1455_v32 = vld [vmem:[%s2475_s4 + $0x10] sm:$0xff] }
  0x36   :  { %1885 = vmatprep.mubr.f32.mxu1 %v797_v40  ;;  %v769_v55 = vsub.f32 %v767_v26, %v768_v9  ;;  %v2122_v40 = vmov 0.0|0.0  }
  0x37   :  { %1823 = vmatmul.mubr.f32.vlgmr.msra.gmra.mrb[0].mxu0 %v2196_v16  ;;  %v2033_v16 = vpack.c.bf16 %v840_v2, %v833_v1  ;;  %v790_v1 = vand.u32 4294901760, %v789_v60  ;;  %v809_v2 = vsub.f32 %v807_v20, %v808_v0 }
  0x38   :  { %1825 = vmatprep.mubr.f32.mxu0 %v2217_v23  ;;  %2000 = vmatpush3.bf16.msra.mxu0 %v2363_v29  ;;  %v750_v23 = vand.u32 4294901760, %v749_v42 }
  0x39   :  { %2002 = vmatprep.subr.bf16.mxu0 %v2398_v22  ;;  %1886 = vmatmul.mubr.f32.gmra.mrb[6].mxu1 %v807_v20  ;;  %v810_v4 = vand.u32 4294901760, %v809_v2 }
  0x3a   :  { %1896 = vmatprep.mubr.f32.mxu1 %v738_v39  ;;  %v1456_v39 = vld [vmem:[%s2475_s4 + $0x18] sm:$0xff] }
  0x3b   :  { %1826 = vmatmul.mubr.f32.gmra.mrb[2].mxu0 %v2219_v24  ;;  %v770_v24 = vand.u32 4294901760, %v769_v55  ;;  %v1558_v55 = vld [vmem:[%s2476_s5] sm:$0xff] }
  0x3c   :  { %2004 = vmatpush3.bf16.msra.mxu0 %v2398_v22  ;;  %1836 = vmatprep.mubr.f32.mxu0 %v740_v28 }
  0x3d   :  { %1897 = vmatmul.mubr.f32.vlgmr.msra.gmra.mrb[0].mxu1 %v748_v21 }
  0x3e   :  { %1899 = vmatprep.mubr.f32.mxu1 %v758_v27  ;;  %2032 = vmatpush3.bf16.msra.mxu1 %v2029_v31 }
  0x3f   :  { %2034 = vmatprep.subr.bf16.mxu1 %v2033_v16  ;;  %1837 = vmatmul.mubr.f32.vlgmr.msra.gmra.mrb[4].mxu0 %v750_v23 }
  0x40   :  { %1839 = vmatprep.mubr.f32.mxu0 %v760_v56 }
  0x41   :  { %1900 = vmatmul.mubr.f32.gmra.mrb[2].mxu1 %v768_v9 }
  0x42   :  { %1902 = vmatprep.mubr.f32.mxu1 %v778_v54  ;;  %2036 = vmatpush3.bf16.msra.mxu1 %v2033_v16 }
  0x43   :  { %2038 = vmatprep.subr.bf16.mxu1 %v2363_v29  ;;  %1840 = vmatmul.mubr.f32.gmra.mrb[6].mxu0 %v770_v24 }
  0x44   :  { %1842 = vmatprep.mubr.f32.mxu0 %v780_v61 }
  0x45   :  { %1903 = vmatmul.mubr.f32.gmra.mrb[4].mxu1 %v788_v58 }
  0x46   :  { %1905 = vmatprep.mubr.f32.mxu1 %v798_v59 }
  0x47   :  { %1843 = vmatmul.mubr.f32.gmra.mrb[8].mxu0 %v790_v1 }
  0x48   :  { %1845 = vmatprep.mubr.f32.mxu0 %v800_v3 }
  0x49   :  { %1906 = vmatmul.mubr.f32.gmra.mrb[6].mxu1 %v808_v0 }
  0x4a   :  { %1916 = vmatprep.mubr.f32.mxu1 %v2293_v63 }
  0x4b   :  { %1846 = vmatmul.mubr.f32.gmra.mrb[10].mxu0 %v810_v4 }
  0x4c   :  { %1956 = vmatprep.mubr.msk.f32.mxu0 %vm642_vm1, %v1453_v5 }
  0x4d   :  { %1917 = vmatmul.mubr.f32.vlgmr.msra.gmra.mrb[0].mxu1 %v2326_v38 }
  0x4e   :  { %1919 = vmatprep.mubr.f32.mxu1 %v2328_v41  ;;  %2040 = vmatpush3.bf16.msra.mxu1 %v2363_v29 }
  0x4f   :  { %2042 = vmatprep.subr.bf16.mxu1 %v2398_v22 }
  0x51   :  { %1920 = vmatmul.mubr.f32.gmra.mrb[2].mxu1 %v2343_v49 }
  0x52   :  { %1922 = vmatprep.mubr.f32.mxu1 %v2350_v51  ;;  %2044 = vmatpush3.bf16.msra.mxu1 %v2398_v22 }
  0x55   :  { %1923 = vmatmul.mubr.f32.gmra.mrb[4].mxu1 %v2367_v33 }
  0x56   :  { %1925 = vmatprep.mubr.f32.mxu1 %v2370_v37 }
  0x59   :  { %1926 = vmatmul.mubr.f32.gmra.mrb[6].mxu1 %v2378_v8 }
  0x5a   :  { %1936 = vmatprep.mubr.f32.mxu1 %v2293_v63 }
  0x5d   :  { %1937 = vmatmul.mubr.f32.vlgmr.msra.gmra.mrb[0].mxu1 %v2326_v38 }
  0x5e   :  { %1939 = vmatprep.mubr.f32.mxu1 %v2328_v41 }
  0x61   :  { %1940 = vmatmul.mubr.f32.gmra.mrb[2].mxu1 %v2343_v49 }
  0x62   :  { %1942 = vmatprep.mubr.f32.mxu1 %v2350_v51 }
  0x65   :  { %1943 = vmatmul.mubr.f32.gmra.mrb[4].mxu1 %v2367_v33 }
  0x66   :  { %1945 = vmatprep.mubr.f32.mxu1 %v2370_v37 }
  0x69   :  { %1946 = vmatmul.mubr.f32.gmra.mrb[6].mxu1 %v2378_v8 }
 0x10a   :  { %v1824_v63 = vpop.f32.mrb[0].mxu0 }
 0x10b   :  { %v608_v6 = vpop.f32.mrb[1].mxu0 }
 0x10e   :  { %v1827_v10 = vpop.f32.mrb[2].mxu0 }
 0x10f   :  { %v620_v13 = vpop.f32.mrb[3].mxu0 }
 0x112   :  { %v1838_v14 = vpop.f32.mrb[4].mxu0 }
 0x113   :  { %v742_v17 = vpop.f32.mrb[5].mxu0 }
 0x116   :  { %v1841_v18 = vpop.f32.mrb[6].mxu0 }
 0x117   :  { %v762_v34 = vpop.f32.mrb[7].mxu0 }
 0x11a   :  { %v1844_v35 = vpop.f32.mrb[8].mxu0 }
 0x11b   :  { %v782_v36 = vpop.f32.mrb[9].mxu0 }
 0x11e   :  { %v1847_v38 = vpop.f32.mrb[10].mxu0 }
 0x11f   :  { %v802_v41 = vpop.f32.mrb[11].mxu0 }
 0x130   :  { %v1938_v44 = vpop.f32.mrb[0].mxu1 }
 0x131   :  { %v2059_v45 = vadd.f32 %v1938_v44, %v1838_v14  ;;  %v1407_v46 = vpop.f32.mrb[1].mxu1 }
 0x132   :  { %v2060_v47 = vadd.f32 %v1407_v46, %v742_v17 }
 0x133   :  { %v1458_v48 = vmul.f32 %v2059_v45, %v1824_v63 }
 0x134   :  { %v1457_v49 = vmul.f32 %v2060_v47, %v608_v6  ;;  %v1941_v50 = vpop.f32.mrb[2].mxu1 }
 0x135   :  { %v2061_v51 = vadd.f32 %v1941_v50, %v1841_v18  ;;  %v1419_v52 = vpop.f32.mrb[3].mxu1 }
 0x136   :  { %v2062_v53 = vadd.f32 %v1419_v52, %v762_v34  ;;  %v2045_v25 = vpack.c.bf16 %v1458_v48, %v1457_v49 }
 0x137   :  { %v1460_v29 = vmul.f32 %v2061_v51, %v1827_v10 }
 0x138   :  { %v1459_v33 = vmul.f32 %v2062_v53, %v620_v13  ;;  %v1944_v37 = vpop.f32.mrb[4].mxu1  ;;  %2046 = vmatprep.subr.bf16.mxu0 %v2045_v25 }
 0x139   :  { %v2063_v7 = vadd.f32 %v1944_v37, %v1844_v35  ;;  %v1431_v8 = vpop.f32.mrb[5].mxu1  ;;  %2048 = vmatpush3.bf16.msra.mxu0 %v2045_v25 }
 0x13a   :  { %v2064_v11 = vadd.f32 %v1431_v8, %v782_v36  ;;  %v2049_v12 = vpack.c.bf16 %v1460_v29, %v1459_v33 }
 0x13c   :  { %v1947_v19 = vpop.f32.mrb[6].mxu1  ;;  %2050 = vmatprep.subr.bf16.mxu0 %v2049_v12 }
 0x13d   :  { %v2065_v22 = vadd.f32 %v1947_v19, %v1847_v38  ;;  %v1443_v26 = vpop.f32.mrb[7].mxu1  ;;  %2052 = vmatpush3.bf16.msra.mxu0 %v2049_v12 }
 0x13e   :  { %v2066_v31 = vadd.f32 %v1443_v26, %v802_v41  ;;  %2053 = vmatprep.subr.bf16.mxu0 %v2122_v40 }
 0x140   :  { %1957 = vmatmul.mubr.msk.f32.vlgmr.msra.gmra.mrb[12].mxu0 %vm642_vm1, %v1454_v30 }
 0x141   :  { %1959 = vmatprep.mubr.msk.f32.mxu0 %vm642_vm1, %v1455_v32 }
 0x144   :  { %1960 = vmatmul.mubr.msk.f32.gmra.mrb[14].mxu0 %vm642_vm1, %v1456_v39 }
 0x145   :  { %1970 = vmatprep.mubr.msk.f32.mxu0 %vm2123_vm2, %v2124_v15 }
 0x213   :  { %v1958_v20 = vpop.f32.mrb[12].mxu0 }
 0x214   :  { %v1560_v21 = vmul.f32 %v2063_v7, %v1958_v20  ;;  %v1539_v27 = vpop.f32.mrb[13].mxu0 }
 0x215   :  { %v1559_v28 = vmul.f32 %v2064_v11, %v1539_v27 }
 0x217   :  { %v2054_v42 = vpack.c.bf16 %v1560_v21, %v1559_v28  ;;  %v1961_v43 = vpop.f32.mrb[14].mxu0 }
 0x218   :  { %v1562_v9 = vmul.f32 %v2065_v22, %v1961_v43  ;;  %v1549_v54 = vpop.f32.mrb[15].mxu0 }
 0x219   :  { %v1561_v16 = vmul.f32 %v2066_v31, %v1549_v54  ;;  %2055 = vmatpush3.bf16.msra.mxu0 %v2054_v42 }
 0x21a   :  { %2056 = vmatprep.subr.bf16.mxu0 %v2122_v40 }
 0x21b   :  { %v2057_v23 = vpack.c.bf16 %v1562_v9, %v1561_v16 }
 0x21d   :  { %2058 = vmatpush3.bf16.msra.mxu0 %v2057_v23 }
 0x220   :  { %1971 = vmatmul.mubr.msk.f32.vlgmr.msra.gmra.mrb[16].mxu0 %vm642_vm1, %v1558_v55 }
 0x2f3   :  { %v1632_v56 = vpop.f32.mrb[16].mxu0 }
 0x2f4   :  { %1637 = vst.msk [vmem:[%s2477_s6] sm:$0xff] %vm1636_vm3, %v1632_v56  ;;  %v1972_v57 = vpop.f32.mrb[17].mxu0 }

</bundles_post_ra>
